<compile_context>
chip_gen: v7x
topology: tpu7x:2x2x1
jax: 0.10.0
libtpu: 0.0.40
codegen_flags: <defaults>
</compile_context>

<pallas_src>
import functools

import jax
import jax.numpy as jnp
import numpy as np
from jax.experimental import pallas as pl
from jax.experimental.pallas import tpu as pltpu


def _round_up(a: int, b: int) -> int:
    return -(-a // b) * b


def _vmem_capacity_bytes() -> int:
    """Physical VMEM per TensorCore; conservative fallback if unqueryable."""
    try:
        cap = int(pltpu.get_tpu_info().vmem_capacity_bytes)
        if cap > 0:
            return cap
    except Exception:
        pass
    return 64 << 20  # assume the smallest part (v7x) when we cannot query


# ---------------------------------------------------------------------------
# Kernel
# ---------------------------------------------------------------------------
def _upsample1d_kernel(x_ref, h_ref, w_ref, b_ref, y_ref, *, mask_period):
    """One row-tile of the transposed conv (channels-last).

    x_ref: (tl, C_in)        input rows of this tile
    h_ref: (2, c_pad) f32    precomputed halo contributions:
                               [0] = x[row-1] @ w3 for the FIRST row of the tile
                               [1] = x[row+1] @ w0 for the LAST  row of the tile
                             (zeros at sequence / batch edges)
    w_ref: (C_in, 4*c_pad)   fused taps, column blocks [w0 | w1 | w2 | w3]
    b_ref: (1, 2*c_pad) f32  [bias | bias]
    y_ref: (tl, 2*c_pad)     row m = [y[2m] | y[2m+1]]
    mask_period: 0 -> tile lies inside a single batch element (no mask);
                 L -> batch elements of length L are stacked in the tile;
                      zero the cross-row terms at the batch boundaries.
    """
    x = x_ref[...]
    w = w_ref[...]
    tl = x.shape[0]
    c = w.shape[1] // 4

    # One wide MXU matmul for all four taps.
    p = jnp.dot(x, w, preferred_element_type=jnp.float32)        # (tl, 4c) f32
    p0 = p[:, 0 * c:1 * c]    # x[m] @ w0  (feeds odd output of row m-1)
    p1 = p[:, 1 * c:2 * c]    # x[m] @ w1  (even output of row m)
    p2 = p[:, 2 * c:3 * c]    # x[m] @ w2  (odd output of row m)
    p3 = p[:, 3 * c:4 * c]    # x[m] @ w3  (feeds even output of row m+1)

    h = h_ref[...].astype(jnp.float32)                            # (2, c)

    # +/-1 row shifts: TPU roll only takes non-negative shifts, so shift by
    # concatenating the boundary row instead; this also folds in the halo.
    p3_dn = jnp.concatenate([h[0:1, :], p3[:-1, :]], axis=0)      # x[m-1] @ w3
    p0_up = jnp.concatenate([p0[1:, :], h[1:2, :]], axis=0)       # x[m+1] @ w0

    if mask_period:
        # Batch-folded tile: zero cross-row terms at (static) batch boundaries.
        row = jax.lax.broadcasted_iota(jnp.int32, (tl, 1), 0) % mask_period
        p3_dn = jnp.where(row == 0, 0.0, p3_dn)
        p0_up = jnp.where(row == mask_period - 1, 0.0, p0_up)

    b = b_ref[...].astype(jnp.float32)                            # (1, 2c)

    # Two direct lane-dense sub-stores; no lane-axis concatenate temp.
    y_ref[:, :c] = (p1 + p3_dn + b[:, :c]).astype(y_ref.dtype)
    y_ref[:, c:] = (p2 + p0_up + b[:, c:]).astype(y_ref.dtype)


# ---------------------------------------------------------------------------
# Wrapper
# ---------------------------------------------------------------------------
def upsample1d_nlc(x_nlc, weight, bias, *, tile_l=None, compute_dtype=None,
                   out_dtype=None):
    """ConvTranspose1d(C, C, 4, stride=2, padding=1) on channels-last input.

    x_nlc:  (N, L, C_in);  weight: (C_in, C_out, 4) (PyTorch layout);  bias: (C_out,)
    returns (N, 2*L, C_out)

    compute_dtype: optional narrower matmul dtype (e.g. jnp.bfloat16); the op is
      HBM-bound for typical C, so bf16 roughly halves traffic.  Accumulation is
      always f32.  Default keeps the input dtype (matches the PyTorch module).
    """
    N, L, C_in = x_nlc.shape
    assert weight.ndim == 3 and weight.shape[0] == C_in and weight.shape[2] == 4
    C_out = weight.shape[1]

    cd = np.dtype(compute_dtype) if compute_dtype is not None else np.dtype(x_nlc.dtype)
    od = np.dtype(out_dtype) if out_dtype is not None else cd

    # Lane padding: keep all slices / stores unmasked when it costs <= 2x.
    if C_out % 128 == 0 or C_out < 64:
        c_pad = C_out
    else:
        c_pad = _round_up(C_out, 128)

    # Fused weight (C_in, 4*c_pad) = [w0 | w1 | w2 | w3]; duplicated f32 bias.
    w4 = jnp.transpose(weight, (0, 2, 1))                         # (C_in, 4, C_out)
    if c_pad != C_out:
        w4 = jnp.pad(w4, ((0, 0), (0, 0), (0, c_pad - C_out)))
    w_cat = w4.reshape(C_in, 4 * c_pad).astype(cd)
    b_pad = jnp.zeros((c_pad,), jnp.float32).at[:C_out].set(bias.astype(jnp.float32))
    b2 = jnp.concatenate([b_pad, b_pad]).reshape(1, 2 * c_pad)

    x_c = x_nlc.astype(cd)

    # ---- generation-aware tile budget -------------------------------------
    vmem_cap = _vmem_capacity_bytes()
    tile_budget = max(8 << 20, vmem_cap // 5)   # ~25 MiB (v5e/v6e), ~13 MiB (v7x)
    in_isz, out_isz, w_isz = cd.itemsize, od.itemsize, cd.itemsize
    w_bytes = C_in * 4 * c_pad * w_isz
    per_row = 2 * C_in * in_isz + 2 * 2 * c_pad * out_isz + 8 * c_pad * 4
    avail = max(tile_budget - 2 * w_bytes, 8 * per_row)
    rows_cap = int(max(8, min(1024, avail // per_row)))
    # TODO(synk): for very large C (weight ~ tile budget, C>=1024 f32) add a
    # third grid axis tiling the 4*c_pad weight columns to bound resident weight.

    # ---- mode selection -----------------------------------------------------
    use_batched = (tile_l is None) and (N > 1) and (L <= rows_cap)
    if use_batched:
        bn = max(1, min(N, rows_cap // max(L, 1)))
        if bn < N:
            while bn > 1 and (bn * L) % 8 != 0:     # multi-tile blocks need 8-row alignment
                bn -= 1
        if bn <= 1:
            use_batched = False

    if use_batched:
        # Fold bn batch elements per row-tile of the flattened (N*L, C) input;
        # cross-batch halos are always zero -> handled by the in-kernel mask.
        tile_rows = bn * L
        n_row_tiles = -(-N // bn)
        n_pad = n_row_tiles * bn
        x_op = x_c.reshape(N * L, C_in)
        if n_pad != N:
            x_op = jnp.pad(x_op, ((0, (n_pad - N) * L), (0, 0)))
        halo = jnp.zeros((1, 2, c_pad), jnp.float32)
        kernel = functools.partial(_upsample1d_kernel, mask_period=L)
        grid = (n_row_tiles,)
        x_spec = pl.BlockSpec((tile_rows, C_in), lambda t: (t, 0))
        h_spec = pl.BlockSpec((None, 2, c_pad), lambda t: (0, 0, 0))
        w_map = lambda t: (0, 0)
        b_map = lambda t: (0, 0)
        out_specs = pl.BlockSpec((tile_rows, 2 * c_pad), lambda t: (t, 0))
        out_shape = jax.ShapeDtypeStruct((n_pad * L, 2 * c_pad), od)
        dim_sem = ("parallel",)
        rows_total = n_pad * L
        blk_rows = tile_rows
    else:
        # Per-batch L tiling; the x[m-1]/x[m+1] terms at tile edges come from a
        # 2-row halo whose weight products are precomputed outside the kernel.
        if tile_l is None:
            tile_l = min(L, max(8, (rows_cap // 8) * 8))
        tile_l = L if tile_l >= L else max(8, (tile_l // 8) * 8)
        n_tiles = -(-L // tile_l)
        l_pad = n_tiles * tile_l
        x_op = x_c if l_pad == L else jnp.pad(x_c, ((0, 0), (0, l_pad - L), (0, 0)))
        if n_tiles == 1:
            halo = jnp.zeros((N, 1, 2, c_pad), jnp.float32)
        else:
            last_rows = x_op[:, tile_l - 1::tile_l, :].astype(jnp.float32)   # (N, T, C_in)
            first_rows = x_op[:, ::tile_l, :].astype(jnp.float32)            # (N, T, C_in)
            zero_r = jnp.zeros((N, 1, C_in), jnp.float32)
            prev_rows = jnp.concatenate([zero_r, last_rows[:, :-1]], axis=1)
            next_rows = jnp.concatenate([first_rows[:, 1:], zero_r], axis=1)
            h_prev = jnp.einsum("ntc,co->nto", prev_rows, weight[:, :, 3].astype(jnp.float32))
            h_next = jnp.einsum("ntc,co->nto", next_rows, weight[:, :, 0].astype(jnp.float32))
            halo = jnp.stack([h_prev, h_next], axis=2)                       # (N, T, 2, C_out)
            if c_pad != C_out:
                halo = jnp.pad(halo, ((0, 0), (0, 0), (0, 0), (0, c_pad - C_out)))
        kernel = functools.partial(_upsample1d_kernel, mask_period=0)
        grid = (N, n_tiles)
        x_spec = pl.BlockSpec((None, tile_l, C_in), lambda n, t: (n, t, 0))
        h_spec = pl.BlockSpec((None, None, 2, c_pad), lambda n, t: (n, t, 0, 0))
        w_map = lambda n, t: (0, 0)
        b_map = lambda n, t: (0, 0)
        out_specs = pl.BlockSpec((None, tile_l, 2 * c_pad), lambda n, t: (n, t, 0))
        out_shape = jax.ShapeDtypeStruct((N, l_pad, 2 * c_pad), od)
        dim_sem = ("parallel", "parallel")
        rows_total = N * l_pad
        blk_rows = tile_l

    # ---- VMEM limit: ALWAYS set (v5e's default scoped limit is only 16 MiB) --
    vmem_est = (2 * blk_rows * C_in * in_isz             # x blocks (double buffered)
                + 2 * blk_rows * 2 * c_pad * out_isz     # y blocks (double buffered)
                + 2 * 2 * c_pad * 4                      # halo blocks
                + 2 * w_bytes + 2 * 2 * c_pad * 4        # weight + bias residency
                + 8 * blk_rows * c_pad * 4)              # f32 temporaries
    vmem_limit = int(min(max(vmem_est + (8 << 20), 32 << 20), (vmem_cap * 7) // 8))

    flops = 2 * rows_total * C_in * 4 * c_pad
    bytes_accessed = (rows_total * C_in * in_isz
                      + rows_total * 2 * c_pad * out_isz
                      + w_bytes + 2 * c_pad * 4 + int(np.prod(halo.shape)) * 4)

    def _run(single_buffer_weights):
        # Constant-index weight/bias blocks: single-buffer them when supported
        # (saves a second weight-sized VMEM slab - matters most on v7x 64 MiB).
        kw = {}
        if single_buffer_weights and hasattr(pl, "Buffered"):
            kw = {"pipeline_mode": pl.Buffered(1)}
        try:
            w_spec = pl.BlockSpec((C_in, 4 * c_pad), w_map, **kw)
            b_spec = pl.BlockSpec((1, 2 * c_pad), b_map, **kw)
        except TypeError:
            w_spec = pl.BlockSpec((C_in, 4 * c_pad), w_map)
            b_spec = pl.BlockSpec((1, 2 * c_pad), b_map)
        # TODO(synk): on 128-MiB parts (v5e/v6e) raise x_spec to
        # pipeline_mode=pl.Buffered(3) if profiling shows exposed DMA.
        return pl.pallas_call(
            kernel,
            out_shape=out_shape,
            grid_spec=pltpu.PrefetchScalarGridSpec(
                num_scalar_prefetch=0,
                grid=grid,
                in_specs=[x_spec, h_spec, w_spec, b_spec],
                out_specs=out_specs,
            ),
            compiler_params=pltpu.CompilerParams(
                dimension_semantics=dim_sem, vmem_limit_bytes=vmem_limit),
            cost_estimate=pl.CostEstimate(
                flops=int(flops), transcendentals=0,
                bytes_accessed=int(bytes_accessed)),
        )(x_op, halo, w_cat, b2)

    try:
        y = _run(True)
    except Exception:
        # pipeline_mode / Buffered(1) not supported by this jax build or mode.
        y = _run(False)

    if use_batched:
        y2 = y[:N * L].reshape(N, L, 2 * c_pad)
    else:
        y2 = y[:, :L, :]
    if c_pad == C_out:
        # (N, L, 2*C) -> (N, 2L, C): free contiguous reshape = even/odd interleave.
        return y2.reshape(N, 2 * L, C_out)
    even = y2[..., :C_out]
    odd = y2[..., c_pad:c_pad + C_out]
    return jnp.stack([even, odd], axis=2).reshape(N, 2 * L, C_out)


def upsample1d(x, weight, bias, *, tile_l=None, compute_dtype=None, out_dtype=None):
    """PyTorch-facing NCL interface: x (N, C, L) -> (N, C, 2L).

    NOTE: each transpose is a full extra HBM pass on a memory-bound op; if the
    surrounding model keeps activations channels-last, call upsample1d_nlc
    directly and skip both transposes.
    """
    y_nlc = upsample1d_nlc(jnp.transpose(x, (0, 2, 1)), weight, bias,
                           tile_l=tile_l, compute_dtype=compute_dtype,
                           out_dtype=out_dtype)
    return jnp.transpose(y_nlc, (0, 2, 1))


def _ref_conv_transpose1d(x, weight, bias, stride=2, padding=1):
    """Pure-JAX reference for ConvTranspose1d (NCL, PyTorch weight layout)."""
    N, C_in, L = x.shape
    C_out, K = weight.shape[1], weight.shape[2]
    full_len = (L - 1) * stride + K
    y_full = jnp.zeros((N, C_out, full_len), dtype=jnp.float32)
    for k in range(K):
        contrib = jnp.einsum("ncl,co->nol", x, weight[:, :, k])
        y_full = y_full.at[:, :, k: k + stride * (L - 1) + 1: stride].add(contrib)
    L_out = (L - 1) * stride - 2 * padding + K
    y = y_full[:, :, padding: padding + L_out]
    return y + bias.reshape(1, C_out, 1)


if __name__ == "__main__":
    N, dim, L = 2, 8, 16  # small shapes: batch=2, channels=8, spatial=16

    key = jax.random.PRNGKey(0)
    k1, k2, k3 = jax.random.split(key, 3)
    x = jax.random.normal(k1, (N, dim, L), dtype=jnp.float32)
    weight = jax.random.normal(k2, (dim, dim, 4), dtype=jnp.float32) * 0.1
    bias = jax.random.normal(k3, (dim,), dtype=jnp.float32) * 0.1

    ref = _ref_conv_transpose1d(x, weight, bias)

    # Default path: batch-folded single row-tile (small L, small C regime).
    out = jax.block_until_ready(upsample1d(x, weight, bias))
    assert out.shape == (N, dim, 2 * L), out.shape
    assert jnp.allclose(out, ref, atol=1e-4, rtol=1e-4), "mismatch (batched)"

    # Forced L tiling: per-batch tiles + halo handling (tile_l=8 -> 2 tiles).
    out_tiled = jax.block_until_ready(upsample1d(x, weight, bias, tile_l=8))
    assert jnp.allclose(out_tiled, ref, atol=1e-4, rtol=1e-4), "mismatch (tiled)"

    # Optional bf16 compute path (HBM-bound op -> ~2x less traffic); loose tol.
    out_bf16 = jax.block_until_ready(
        upsample1d(x, weight, bias, compute_dtype=jnp.bfloat16))
    assert jnp.allclose(out_bf16.astype(jnp.float32), ref,
                        atol=5e-2, rtol=5e-2), "mismatch (bf16)"

    # Lane-padded path: C_out=64 -> padded to 128 lanes inside the kernel.
    dim2 = 64
    x2 = jax.random.normal(k1, (N, dim2, L), dtype=jnp.float32)
    weight2 = jax.random.normal(k2, (dim2, dim2, 4), dtype=jnp.float32) * 0.05
    bias2 = jax.random.normal(k3, (dim2,), dtype=jnp.float32) * 0.05
    ref2 = _ref_conv_transpose1d(x2, weight2, bias2)
    out2 = jax.block_until_ready(upsample1d(x2, weight2, bias2))
    assert jnp.allclose(out2, ref2, atol=1e-4, rtol=1e-4), "mismatch (lane-padded)"

    print("KERNEL_OK")
</pallas_src>

<mosaic_0001>
module attributes {stable_mosaic.version = 11 : i64} {
  func.func @_upsample1d_kernel(%arg0: i32, %arg1: memref<32x8xf32, #tpu.memory_space<vmem>>, %arg2: memref<1x2x8xf32, #tpu.memory_space<vmem>>, %arg3: memref<8x32xf32, #tpu.memory_space<vmem>>, %arg4: memref<1x16xf32, #tpu.memory_space<vmem>>, %arg5: memref<32x16xf32, #tpu.memory_space<vmem>>) attributes {dimension_semantics = [#tpu.dimension_semantics<parallel>], iteration_bounds = array<i64: 1>, scalar_prefetch = 0 : i64, scratch_operands = 0 : i64, tpu.core_type = #tpu.core_type<tc>, window_params = [{transform_indices = @transform_0, window_bounds = array<i64: 32, 8>}, {pipeline_mode = #tpu.pipeline_mode<synchronous>, transform_indices = @transform_1, window_bounds = array<i64: 1, 2, 8>}, {pipeline_mode = #tpu.pipeline_mode<synchronous>, transform_indices = @transform_2, window_bounds = array<i64: 8, 32>}, {pipeline_mode = #tpu.pipeline_mode<synchronous>, transform_indices = @transform_3, window_bounds = array<i64: 1, 16>}, {transform_indices = @transform_4, window_bounds = array<i64: 32, 16>}]} {
    %c0 = arith.constant 0 : index
    %c0_0 = arith.constant 0 : index
    %0 = vector.load %arg1[%c0, %c0_0] : memref<32x8xf32, #tpu.memory_space<vmem>>, vector<32x8xf32>
    %c0_1 = arith.constant 0 : index
    %c0_2 = arith.constant 0 : index
    %1 = vector.load %arg3[%c0_1, %c0_2] : memref<8x32xf32, #tpu.memory_space<vmem>>, vector<8x32xf32>
    %cst = arith.constant dense<0.000000e+00> : vector<32x32xf32>
    %2 = tpu.matmul %0, %1, %cst {dimension_numbers = #tpu.dot_dimension_numbers<[1], [0], [0], [1], [0, 0, 1, 1], [], []>} : vector<32x8xf32>, vector<8x32xf32>, vector<32x32xf32> -> vector<32x32xf32>
    %3 = vector.extract_strided_slice %2 {offsets = [0, 0], sizes = [32, 8], strides = [1, 1]} : vector<32x32xf32> to vector<32x8xf32>
    %4 = vector.extract_strided_slice %2 {offsets = [0, 8], sizes = [32, 8], strides = [1, 1]} : vector<32x32xf32> to vector<32x8xf32>
    %5 = vector.extract_strided_slice %2 {offsets = [0, 16], sizes = [32, 8], strides = [1, 1]} : vector<32x32xf32> to vector<32x8xf32>
    %6 = vector.extract_strided_slice %2 {offsets = [0, 24], sizes = [32, 8], strides = [1, 1]} : vector<32x32xf32> to vector<32x8xf32>
    %c0_3 = arith.constant 0 : index
    %c0_4 = arith.constant 0 : index
    %c0_5 = arith.constant 0 : index
    %7 = vector.load %arg2[%c0_3, %c0_4, %c0_5] : memref<1x2x8xf32, #tpu.memory_space<vmem>>, vector<1x2x8xf32>
    %8 = vector.shape_cast %7 : vector<1x2x8xf32> to vector<2x8xf32>
    %9 = vector.extract_strided_slice %8 {offsets = [0, 0], sizes = [1, 8], strides = [1, 1]} : vector<2x8xf32> to vector<1x8xf32>
    %10 = vector.extract_strided_slice %6 {offsets = [0, 0], sizes = [31, 8], strides = [1, 1]} : vector<32x8xf32> to vector<31x8xf32>
    %11 = tpu.concatenate %9, %10 in 0 : vector<1x8xf32>, vector<31x8xf32> -> vector<32x8xf32>
    %12 = vector.extract_strided_slice %3 {offsets = [1, 0], sizes = [31, 8], strides = [1, 1]} : vector<32x8xf32> to vector<31x8xf32>
    %13 = vector.extract_strided_slice %8 {offsets = [1, 0], sizes = [1, 8], strides = [1, 1]} : vector<2x8xf32> to vector<1x8xf32>
    %14 = tpu.concatenate %12, %13 in 0 : vector<31x8xf32>, vector<1x8xf32> -> vector<32x8xf32>
    %15 = tpu.iota {dimensions = array<i32: 0>} : vector<32x1xi32>
    %c16_i32 = arith.constant 16 : i32
    %c0_i32 = arith.constant 0 : i32
    %16 = arith.cmpi eq, %c16_i32, %c0_i32 : i32
    %c1_i32 = arith.constant 1 : i32
    %17 = arith.select %16, %c1_i32, %c16_i32 : i32
    %18 = vector.broadcast %17 : i32 to vector<32x1xi32>
    %19 = arith.remsi %15, %18 : vector<32x1xi32>
    %c0_i32_6 = arith.constant 0 : i32
    %20 = vector.broadcast %c0_i32_6 : i32 to vector<32x1xi32>
    %21 = arith.cmpi ne, %19, %20 : vector<32x1xi32>
    %c0_i32_7 = arith.constant 0 : i32
    %22 = vector.broadcast %c0_i32_7 : i32 to vector<32x1xi32>
    %23 = arith.cmpi slt, %19, %22 : vector<32x1xi32>
    %c0_i32_8 = arith.constant 0 : i32
    %24 = arith.cmpi slt, %17, %c0_i32_8 : i32
    %25 = vector.broadcast %24 : i1 to vector<32x1xi1>
    %26 = vector.broadcast %25 : vector<32x1xi1> to vector<32x1xi1>
    %27 = arith.xori %23, %26 : vector<32x1xi1>
    %28 = arith.andi %27, %21 : vector<32x1xi1>
    %29 = vector.broadcast %17 : i32 to vector<32x1xi32>
    %30 = arith.addi %19, %29 : vector<32x1xi32>
    %31 = arith.select %28, %30, %19 : vector<32x1xi1>, vector<32x1xi32>
    %c0_i32_9 = arith.constant 0 : i32
    %32 = vector.broadcast %c0_i32_9 : i32 to vector<32x1xi32>
    %33 = arith.cmpi eq, %31, %32 : vector<32x1xi32>
    %cst_10 = arith.constant 0.000000e+00 : f32
    %34 = vector.shape_cast %33 : vector<32x1xi1> to vector<32x1xi1>
    %35 = vector.broadcast %34 : vector<32x1xi1> to vector<32x8xi1>
    %36 = vector.broadcast %cst_10 : f32 to vector<32x8xf32>
    %37 = arith.select %35, %36, %11 : vector<32x8xi1>, vector<32x8xf32>
    %c15_i32 = arith.constant 15 : i32
    %38 = vector.broadcast %c15_i32 : i32 to vector<32x1xi32>
    %39 = arith.cmpi eq, %31, %38 : vector<32x1xi32>
    %cst_11 = arith.constant 0.000000e+00 : f32
    %40 = vector.shape_cast %39 : vector<32x1xi1> to vector<32x1xi1>
    %41 = vector.broadcast %40 : vector<32x1xi1> to vector<32x8xi1>
    %42 = vector.broadcast %cst_11 : f32 to vector<32x8xf32>
    %43 = arith.select %41, %42, %14 : vector<32x8xi1>, vector<32x8xf32>
    %c0_12 = arith.constant 0 : index
    %c0_13 = arith.constant 0 : index
    %44 = vector.load %arg4[%c0_12, %c0_13] : memref<1x16xf32, #tpu.memory_space<vmem>>, vector<1x16xf32>
    %45 = arith.addf %4, %37 : vector<32x8xf32>
    %46 = vector.extract_strided_slice %44 {offsets = [0, 0], sizes = [1, 8], strides = [1, 1]} : vector<1x16xf32> to vector<1x8xf32>
    %47 = vector.broadcast %46 : vector<1x8xf32> to vector<32x8xf32>
    %48 = arith.addf %45, %47 : vector<32x8xf32>
    %c0_14 = arith.constant 0 : index
    %c0_15 = arith.constant 0 : index
    %49 = vector.load %arg5[%c0_14, %c0_15] : memref<32x16xf32, #tpu.memory_space<vmem>>, vector<32x8xf32>
    tpu.vector_store %arg5[%c0_14, %c0_15], %48 {strides = array<i32>} : memref<32x16xf32, #tpu.memory_space<vmem>>, vector<32x8xf32>,
    %50 = arith.addf %5, %43 : vector<32x8xf32>
    %51 = vector.extract_strided_slice %44 {offsets = [0, 8], sizes = [1, 8], strides = [1, 1]} : vector<1x16xf32> to vector<1x8xf32>
    %52 = vector.broadcast %51 : vector<1x8xf32> to vector<32x8xf32>
    %53 = arith.addf %50, %52 : vector<32x8xf32>
    %c0_16 = arith.constant 0 : index
    %c8 = arith.constant 8 : index
    %54 = vector.load %arg5[%c0_16, %c8] : memref<32x16xf32, #tpu.memory_space<vmem>>, vector<32x8xf32>
    tpu.vector_store %arg5[%c0_16, %c8], %53 {strides = array<i32>} : memref<32x16xf32, #tpu.memory_space<vmem>>, vector<32x8xf32>,
    return
  }
  func.func @transform_0(%arg0: i32) -> (i32, i32) {
    %c0_i32 = arith.constant 0 : i32
    %c0_i32_0 = arith.constant 0 : i32
    return %arg0, %c0_i32 : i32, i32
  }
  func.func @transform_1(%arg0: i32) -> (i32, i32, i32) {
    %c0_i32 = arith.constant 0 : i32
    %c0_i32_0 = arith.constant 0 : i32
    %c0_i32_1 = arith.constant 0 : i32
    %c0_i32_2 = arith.constant 0 : i32
    return %c0_i32, %c0_i32_0, %c0_i32_1 : i32, i32, i32
  }
  func.func @transform_2(%arg0: i32) -> (i32, i32) {
    %c0_i32 = arith.constant 0 : i32
    %c0_i32_0 = arith.constant 0 : i32
    %c0_i32_1 = arith.constant 0 : i32
    return %c0_i32, %c0_i32_0 : i32, i32
  }
  func.func @transform_3(%arg0: i32) -> (i32, i32) {
    %c0_i32 = arith.constant 0 : i32
    %c0_i32_0 = arith.constant 0 : i32
    %c0_i32_1 = arith.constant 0 : i32
    return %c0_i32, %c0_i32_0 : i32, i32
  }
  func.func @transform_4(%arg0: i32) -> (i32, i32) {
    %c0_i32 = arith.constant 0 : i32
    %c0_i32_0 = arith.constant 0 : i32
    return %arg0, %c0_i32 : i32, i32
  }
}

module attributes {stable_mosaic.version = 11 : i64} {
  func.func @_upsample1d_kernel(%arg0: i32, %arg1: memref<32x8xf32, #tpu.memory_space<vmem>>, %arg2: memref<1x2x8xf32, #tpu.memory_space<vmem>>, %arg3: memref<8x32xf32, #tpu.memory_space<vmem>>, %arg4: memref<1x16xf32, #tpu.memory_space<vmem>>, %arg5: memref<32x16xf32, #tpu.memory_space<vmem>>) attributes {dimension_semantics = [#tpu.dimension_semantics<parallel>], iteration_bounds = array<i64: 1>, scalar_prefetch = 0 : i64, scratch_operands = 0 : i64, tpu.core_type = #tpu.core_type<tc>, window_params = [{transform_indices = @transform_0, window_bounds = array<i64: 32, 8>}, {pipeline_mode = #tpu.pipeline_mode<synchronous>, transform_indices = @transform_1, window_bounds = array<i64: 1, 2, 8>}, {pipeline_mode = #tpu.pipeline_mode<synchronous>, transform_indices = @transform_2, window_bounds = array<i64: 8, 32>}, {pipeline_mode = #tpu.pipeline_mode<synchronous>, transform_indices = @transform_3, window_bounds = array<i64: 1, 16>}, {transform_indices = @transform_4, window_bounds = array<i64: 32, 16>}]} {
    %c0 = arith.constant 0 : index
    %c0_0 = arith.constant 0 : index
    %0 = vector.load %arg1[%c0, %c0_0] : memref<32x8xf32, #tpu.memory_space<vmem>>, vector<32x8xf32>
    %c0_1 = arith.constant 0 : index
    %c0_2 = arith.constant 0 : index
    %1 = vector.load %arg3[%c0_1, %c0_2] : memref<8x32xf32, #tpu.memory_space<vmem>>, vector<8x32xf32>
    %cst = arith.constant dense<0.000000e+00> : vector<32x32xf32>
    %2 = tpu.matmul %0, %1, %cst {dimension_numbers = #tpu.dot_dimension_numbers<[1], [0], [0], [1], [0, 0, 1, 1], [], []>} : vector<32x8xf32>, vector<8x32xf32>, vector<32x32xf32> -> vector<32x32xf32>
    %3 = vector.extract_strided_slice %2 {offsets = [0, 0], sizes = [32, 8], strides = [1, 1]} : vector<32x32xf32> to vector<32x8xf32>
    %4 = vector.extract_strided_slice %2 {offsets = [0, 8], sizes = [32, 8], strides = [1, 1]} : vector<32x32xf32> to vector<32x8xf32>
    %5 = vector.extract_strided_slice %2 {offsets = [0, 16], sizes = [32, 8], strides = [1, 1]} : vector<32x32xf32> to vector<32x8xf32>
    %6 = vector.extract_strided_slice %2 {offsets = [0, 24], sizes = [32, 8], strides = [1, 1]} : vector<32x32xf32> to vector<32x8xf32>
    %c0_3 = arith.constant 0 : index
    %c0_4 = arith.constant 0 : index
    %c0_5 = arith.constant 0 : index
    %7 = vector.load %arg2[%c0_3, %c0_4, %c0_5] : memref<1x2x8xf32, #tpu.memory_space<vmem>>, vector<1x2x8xf32>
    %8 = vector.shape_cast %7 : vector<1x2x8xf32> to vector<2x8xf32>
    %9 = vector.extract_strided_slice %8 {offsets = [0, 0], sizes = [1, 8], strides = [1, 1]} : vector<2x8xf32> to vector<1x8xf32>
    %10 = vector.extract_strided_slice %6 {offsets = [0, 0], sizes = [31, 8], strides = [1, 1]} : vector<32x8xf32> to vector<31x8xf32>
    %11 = tpu.concatenate %9, %10 in 0 : vector<1x8xf32>, vector<31x8xf32> -> vector<32x8xf32>
    %12 = vector.extract_strided_slice %3 {offsets = [1, 0], sizes = [31, 8], strides = [1, 1]} : vector<32x8xf32> to vector<31x8xf32>
    %13 = vector.extract_strided_slice %8 {offsets = [1, 0], sizes = [1, 8], strides = [1, 1]} : vector<2x8xf32> to vector<1x8xf32>
    %14 = tpu.concatenate %12, %13 in 0 : vector<31x8xf32>, vector<1x8xf32> -> vector<32x8xf32>
    %15 = tpu.iota {dimensions = array<i32: 0>} : vector<32x1xi32>
    %c16_i32 = arith.constant 16 : i32
    %c0_i32 = arith.constant 0 : i32
    %16 = arith.cmpi eq, %c16_i32, %c0_i32 : i32
    %c1_i32 = arith.constant 1 : i32
    %17 = arith.select %16, %c1_i32, %c16_i32 : i32
    %18 = vector.broadcast %17 : i32 to vector<32x1xi32>
    %19 = arith.remsi %15, %18 : vector<32x1xi32>
    %c0_i32_6 = arith.constant 0 : i32
    %20 = vector.broadcast %c0_i32_6 : i32 to vector<32x1xi32>
    %21 = arith.cmpi ne, %19, %20 : vector<32x1xi32>
    %c0_i32_7 = arith.constant 0 : i32
    %22 = vector.broadcast %c0_i32_7 : i32 to vector<32x1xi32>
    %23 = arith.cmpi slt, %19, %22 : vector<32x1xi32>
    %c0_i32_8 = arith.constant 0 : i32
    %24 = arith.cmpi slt, %17, %c0_i32_8 : i32
    %25 = vector.broadcast %24 : i1 to vector<32x1xi1>
    %26 = vector.broadcast %25 : vector<32x1xi1> to vector<32x1xi1>
    %27 = arith.xori %23, %26 : vector<32x1xi1>
    %28 = arith.andi %27, %21 : vector<32x1xi1>
    %29 = vector.broadcast %17 : i32 to vector<32x1xi32>
    %30 = arith.addi %19, %29 : vector<32x1xi32>
    %31 = arith.select %28, %30, %19 : vector<32x1xi1>, vector<32x1xi32>
    %c0_i32_9 = arith.constant 0 : i32
    %32 = vector.broadcast %c0_i32_9 : i32 to vector<32x1xi32>
    %33 = arith.cmpi eq, %31, %32 : vector<32x1xi32>
    %cst_10 = arith.constant 0.000000e+00 : f32
    %34 = vector.shape_cast %33 : vector<32x1xi1> to vector<32x1xi1>
    %35 = vector.broadcast %34 : vector<32x1xi1> to vector<32x8xi1>
    %36 = vector.broadcast %cst_10 : f32 to vector<32x8xf32>
    %37 = arith.select %35, %36, %11 : vector<32x8xi1>, vector<32x8xf32>
    %c15_i32 = arith.constant 15 : i32
    %38 = vector.broadcast %c15_i32 : i32 to vector<32x1xi32>
    %39 = arith.cmpi eq, %31, %38 : vector<32x1xi32>
    %cst_11 = arith.constant 0.000000e+00 : f32
    %40 = vector.shape_cast %39 : vector<32x1xi1> to vector<32x1xi1>
    %41 = vector.broadcast %40 : vector<32x1xi1> to vector<32x8xi1>
    %42 = vector.broadcast %cst_11 : f32 to vector<32x8xf32>
    %43 = arith.select %41, %42, %14 : vector<32x8xi1>, vector<32x8xf32>
    %c0_12 = arith.constant 0 : index
    %c0_13 = arith.constant 0 : index
    %44 = vector.load %arg4[%c0_12, %c0_13] : memref<1x16xf32, #tpu.memory_space<vmem>>, vector<1x16xf32>
    %45 = arith.addf %4, %37 : vector<32x8xf32>
    %46 = vector.extract_strided_slice %44 {offsets = [0, 0], sizes = [1, 8], strides = [1, 1]} : vector<1x16xf32> to vector<1x8xf32>
    %47 = vector.broadcast %46 : vector<1x8xf32> to vector<32x8xf32>
    %48 = arith.addf %45, %47 : vector<32x8xf32>
    %c0_14 = arith.constant 0 : index
    %c0_15 = arith.constant 0 : index
    %49 = vector.load %arg5[%c0_14, %c0_15] : memref<32x16xf32, #tpu.memory_space<vmem>>, vector<32x8xf32>
    tpu.vector_store %arg5[%c0_14, %c0_15], %48 {strides = array<i32>} : memref<32x16xf32, #tpu.memory_space<vmem>>, vector<32x8xf32>,
    %50 = arith.addf %5, %43 : vector<32x8xf32>
    %51 = vector.extract_strided_slice %44 {offsets = [0, 8], sizes = [1, 8], strides = [1, 1]} : vector<1x16xf32> to vector<1x8xf32>
    %52 = vector.broadcast %51 : vector<1x8xf32> to vector<32x8xf32>
    %53 = arith.addf %50, %52 : vector<32x8xf32>
    %c0_16 = arith.constant 0 : index
    %c8 = arith.constant 8 : index
    %54 = vector.load %arg5[%c0_16, %c8] : memref<32x16xf32, #tpu.memory_space<vmem>>, vector<32x8xf32>
    tpu.vector_store %arg5[%c0_16, %c8], %53 {strides = array<i32>} : memref<32x16xf32, #tpu.memory_space<vmem>>, vector<32x8xf32>,
    return
  }
  func.func @transform_0(%arg0: i32) -> (i32, i32) {
    %c0_i32 = arith.constant 0 : i32
    %c0_i32_0 = arith.constant 0 : i32
    return %arg0, %c0_i32 : i32, i32
  }
  func.func @transform_1(%arg0: i32) -> (i32, i32, i32) {
    %c0_i32 = arith.constant 0 : i32
    %c0_i32_0 = arith.constant 0 : i32
    %c0_i32_1 = arith.constant 0 : i32
    %c0_i32_2 = arith.constant 0 : i32
    return %c0_i32, %c0_i32_0, %c0_i32_1 : i32, i32, i32
  }
  func.func @transform_2(%arg0: i32) -> (i32, i32) {
    %c0_i32 = arith.constant 0 : i32
    %c0_i32_0 = arith.constant 0 : i32
    %c0_i32_1 = arith.constant 0 : i32
    return %c0_i32, %c0_i32_0 : i32, i32
  }
  func.func @transform_3(%arg0: i32) -> (i32, i32) {
    %c0_i32 = arith.constant 0 : i32
    %c0_i32_0 = arith.constant 0 : i32
    %c0_i32_1 = arith.constant 0 : i32
    return %c0_i32, %c0_i32_0 : i32, i32
  }
  func.func @transform_4(%arg0: i32) -> (i32, i32) {
    %c0_i32 = arith.constant 0 : i32
    %c0_i32_0 = arith.constant 0 : i32
    return %arg0, %c0_i32 : i32, i32
  }
}

</mosaic_0001>

<bundles_post_ra>
// kernel: tpu_custom_call.1
= control target key start
LH: loop header
LB: loop body
LE: loop exit
PB: predicated region body
PF: predicated region fallthrough
CT: control target
= control target key end

     0   :  { %vm22_vm0 = vcmask 64512   ;;  %v162_v5 = vlaneseq  ;;  %vm125_vm1 = vcmask 1040384   ;;  %vm146_vm2 = vcmask 1046528   ;;  %s375_s26 = smov 8   ;;  %s487_s2 = inlined_call_operand.vmem [shape: f32[8,32], index: 2, kind: input, shape index: {}]   ;;  %s488_s0 = inlined_call_operand.vmem [shape: f32[32,8], index: 0, kind: input, shape index: {}]   ;;  %s489_s1 = inlined_call_operand.vmem [shape: f32[1,2,8], index: 1, kind: input, shape index: {}]   ;;  %s490_s3 = inlined_call_operand.vmem [shape: f32[1,16], index: 3, kind: input, shape index: {}]   ;;  %s491_s4 = inlined_call_operand.vmem [shape: f32[32,16], index: 4, kind: output, shape index: {}]  }
   0x1   :  { %v21_v0 = vld [vmem:[%s487_s2] sm:$0xff]  ;;  %v19_v2 = vld [vmem:[%s488_s0 + $0x10] sm:$0xff]  ;;  %v18_v3 = vld [vmem:[%s488_s0 + $0x8] sm:$0xff]  ;;  %vm340_vm7 = vcmask 130112  }
   0x2   :  { %v17_v1 = vld [vmem:[%s488_s0] sm:$0xff]  ;;  %359 = vmatprep.subr.mxu0 %v21_v0  ;;  %367 = vmatprep.subr.mxu1 %v21_v0  ;;  %v20_v4 = vld [vmem:[%s488_s0 + $0x18] sm:$0xff]  ;;  %v163_v6 = vshrl.u32 %v162_v5, 7  ;;  %s373_s0 = smov 104  }
   0x3   :  { %360 = vmatpush3.msra.mxu0 %v21_v0  ;;  %368 = vmatpush3.msra.mxu1 %v21_v0  ;;  %v120_v7 = vld [vmem:[%s489_s1] sm:$0x3]  ;;  %s374_s1 = smov 16  }
   0x4   :  { %361 = vmatprep.mubr.msk.f32.mxu0 %vm22_vm0, %v17_v1  ;;  %364 = vmatprep.mubr.msk.f32.mxu1 %vm22_vm0, %v19_v2  ;;  %v159_v8 = vrot.slane %v120_v7, 2  ;;  %v164_v11 = vadd.s32 8, %v163_v6  ;;  %v165_v31 = vadd.s32 16, %v163_v6  ;;  %v171_v32 = vand.u32 15, %v163_v6  ;;  %v353_v43 = vld [vmem:[%s490_s3] ss:$0 sm:$0xff] }
   0x5   :  { %362 = vmatmul.mubr.msk.f32.vlgmr.msra.gmra.mrb[0].mxu0 %vm22_vm0, %v18_v3  ;;  %365 = vmatmul.mubr.msk.f32.vlgmr.msra.gmra.mrb[0].mxu1 %vm22_vm0, %v20_v4  ;;  %v166_v34 = vadd.s32 24, %v163_v6  ;;  %s376_s3 = smov 120  }
   0x6   :  { %v178_v28 = vand.u32 15, %v164_v11  ;;  %v185_v33 = vand.u32 15, %v165_v31  ;;  %vm215_vm4 = vcmp.eq.s32.totalorder %v171_v32, 0 }
   0x7   :  { %v192_v39 = vand.u32 15, %v166_v34 }
   0x8   :  { %vm232_vm3 = vcmp.eq.s32.totalorder %v178_v28, 15  ;;  %vm217_vm5 = vcmp.eq.s32.totalorder %v185_v33, 0 }
   0x9   :  { %vm234_vm6 = vcmp.eq.s32.totalorder %v192_v39, 15 }
  0xd8   :  { %v424_v9 = vpop.f32.mrb[0].mxu0  ;;  %v426_v10 = vpop.f32.mrb[0].mxu1 }
  0xd9   :  { %v148_v12 = vrot.slane %v424_v9, 1  ;;  %v131_v13 = vrot.slane %v426_v10, 7  ;;  %v152_v14 = vrot.slane %v426_v10, 1  ;;  %v431_v15 = vpop.f32.mrb[1].mxu0  ;;  %v433_v16 = vpop.f32.mrb[1].mxu1  ;;  %v127_v17 = vrot.slane %v424_v9, 7 }
  0xda   :  { %v147_v18 = vrot.slane %v431_v15, 1  ;;  %v129_v19 = vrot.slane %v433_v16, 7  ;;  %v150_v20 = vrot.slane %v433_v16, 1  ;;  %v126_v21 = vrot.slane %v431_v15, 7 }
  0xdb   :  { %v161_v22 = vsel %vm146_vm2, %v152_v14, %v159_v8 }
  0xdc   :  { %133 = vrot.lane.b32.xlu0 %v126_v21, %s373_s0  ;;  %v128_v23 = vsel %vm125_vm1, %v126_v21, %v127_v17  ;;  %v130_v24 = vsel %vm125_vm1, %v127_v17, %v129_v19  ;;  %v132_v25 = vsel %vm125_vm1, %v129_v19, %v131_v13  ;;  %v149_v26 = vsel %vm146_vm2, %v147_v18, %v148_v12 }
  0xdd   :  { %135 = vrot.lane.b32.xlu1 %v128_v23, %s373_s0  ;;  %v151_v27 = vsel %vm146_vm2, %v148_v12, %v150_v20  ;;  %v153_v29 = vsel %vm146_vm2, %v150_v20, %v152_v14  ;;  %v246_v44 = vsel %vm234_vm6, 0.0, %v161_v22 }
  0xde   :  { %v244_v30 = vsel %vm232_vm3, 0.0, %v151_v27 }
  0xe0   :  { %137 = vrot.lane.b32.xlu0 %v130_v24, %s373_s0 }
  0xe1   :  { %139 = vrot.lane.b32.xlu1 %v132_v25, %s373_s0 }
  0xe4   :  { %304 = vrot.lane.b32.xlu0 %v149_v26, %s374_s1 }
  0xe5   :  { %306 = vrot.lane.b32.xlu1 %v244_v30, %s374_s1 }
  0xe8   :  { %308 = vrot.lane.b32.xlu0 %v153_v29, %s374_s1 }
 0x14e   :  { %v134_v35 = vpop.permute.xlu0 %133 }
 0x14f   :  { %v145_v36 = vsel %vm125_vm1, %v120_v7, %v134_v35  ;;  %v136_v37 = vpop.permute.xlu1 %135 }
 0x150   :  { %254 = vrot.lane.b32.xlu1 %v136_v37, %s375_s26  ;;  %v227_v38 = vsel %vm215_vm4, 0.0, %v145_v36 }
 0x151   :  { %252 = vrot.lane.b32.xlu0 %v227_v38, %s375_s26 }
 0x152   :  { %v138_v40 = vpop.permute.xlu0 %137 }
 0x153   :  { %v229_v41 = vsel %vm217_vm5, 0.0, %v138_v40  ;;  %v140_v42 = vpop.permute.xlu1 %139 }
 0x154   :  { %258 = vrot.lane.b32.xlu1 %v140_v42, %s375_s26 }
 0x155   :  { %256 = vrot.lane.b32.xlu0 %v229_v41, %s375_s26 }
 0x156   :  { %v305_v45 = vpop.permute.xlu0 %304 }
 0x157   :  { %v307_v47 = vpop.permute.xlu1 %306  ;;  %v316_v51 = vadd.f32 %v305_v45, %v431_v15 }
 0x158   :  { %310 = vrot.lane.b32.xlu1 %v246_v44, %s374_s1  ;;  %v317_v52 = vadd.f32 %v424_v9, %v307_v47 }
 0x159   :  { %273 = vrot.lane.b32.xlu0 %v353_v43, %s375_s26 }
 0x15a   :  { %v309_v46 = vpop.permute.xlu0 %308 }
 0x15b   :  { %v318_v3 = vadd.f32 %v309_v46, %v433_v16 }
 0x1c2   :  { %v255_v49 = vpop.permute.xlu1 %254 }
 0x1c3   :  { %v253_v48 = vpop.permute.xlu0 %252  ;;  %v265_v57 = vadd.f32 %v424_v9, %v255_v49 }
 0x1c4   :  { %v264_v58 = vadd.f32 %v253_v48, %v431_v15 }
 0x1c6   :  { %v259_v53 = vpop.permute.xlu1 %258 }
 0x1c7   :  { %v257_v50 = vpop.permute.xlu0 %256  ;;  %v267_v62 = vadd.f32 %v426_v10, %v259_v53 }
 0x1c8   :  { %v266_v63 = vadd.f32 %v257_v50, %v433_v16 }
 0x1ca   :  { %v311_v61 = vpop.permute.xlu1 %310 }
 0x1cb   :  { %v274_v54 = vpop.permute.xlu0 %273  ;;  %v319_v0 = vadd.f32 %v426_v10, %v311_v61 }
 0x1cc   :  { %v320_v55 = vadd.f32 %v316_v51, %v274_v54  ;;  %v321_v56 = vadd.f32 %v317_v52, %v274_v54  ;;  %v276_v59 = vadd.f32 %v274_v54, %v264_v58  ;;  %v277_v60 = vadd.f32 %v274_v54, %v265_v57 }
 0x1cd   :  { %v278_v1 = vadd.f32 %v274_v54, %v266_v63  ;;  %v279_v2 = vadd.f32 %v274_v54, %v267_v62  ;;  %v322_v4 = vadd.f32 %v318_v3, %v274_v54  ;;  %v323_v5 = vadd.f32 %v319_v0, %v274_v54 }
 0x1ce   :  { %328 = vrot.lane.b32.xlu1 %v320_v55, %s376_s3  ;;  %330 = vrot.lane.b32.xlu0 %v321_v56, %s376_s3 }
 0x1d2   :  { %284 = vrot.lane.b32.xlu1 %v276_v59, %s376_s3  ;;  %286 = vrot.lane.b32.xlu0 %v277_v60, %s376_s3 }
 0x1d6   :  { %288 = vrot.lane.b32.xlu1 %v278_v1, %s376_s3  ;;  %290 = vrot.lane.b32.xlu0 %v279_v2, %s376_s3 }
 0x1da   :  { %332 = vrot.lane.b32.xlu1 %v322_v4, %s376_s3  ;;  %334 = vrot.lane.b32.xlu0 %v323_v5, %s376_s3 }
 0x240   :  { %v331_v6 = vpop.permute.xlu0 %330  ;;  %v329_v7 = vpop.permute.xlu1 %328 }
 0x244   :  { %v287_v8 = vpop.permute.xlu0 %286  ;;  %v285_v9 = vpop.permute.xlu1 %284 }
 0x245   :  { %297 = vst.msk [vmem:[%s491_s4 + $0x8] sm:$0xff] %vm22_vm0, %v287_v8  ;;  %296 = vst.msk [vmem:[%s491_s4] sm:$0xff] %vm22_vm0, %v285_v9 }
 0x246   :  { %342 = vst.msk [vmem:[%s491_s4 + $0x8] sm:$0xff] %vm340_vm7, %v331_v6  ;;  %341 = vst.msk [vmem:[%s491_s4] sm:$0xff] %vm340_vm7, %v329_v7 }
 0x248   :  { %v291_v10 = vpop.permute.xlu0 %290  ;;  %v289_v11 = vpop.permute.xlu1 %288 }
 0x249   :  { %299 = vst.msk [vmem:[%s491_s4 + $0x18] sm:$0xff] %vm22_vm0, %v291_v10  ;;  %298 = vst.msk [vmem:[%s491_s4 + $0x10] sm:$0xff] %vm22_vm0, %v289_v11 }
 0x24c   :  { %v335_v12 = vpop.permute.xlu0 %334  ;;  %v333_v13 = vpop.permute.xlu1 %332 }
 0x24d   :  { %344 = vst.msk [vmem:[%s491_s4 + $0x18] sm:$0xff] %vm340_vm7, %v335_v12  ;;  %343 = vst.msk [vmem:[%s491_s4 + $0x10] sm:$0xff] %vm340_vm7, %v333_v13 }

// kernel: tpu_custom_call.1
= control target key start
LH: loop header
LB: loop body
LE: loop exit
PB: predicated region body
PF: predicated region fallthrough
CT: control target
= control target key end

     0   :  { %vm22_vm0 = vcmask 64512   ;;  %v162_v5 = vlaneseq  ;;  %vm125_vm1 = vcmask 1040384   ;;  %vm146_vm2 = vcmask 1046528   ;;  %s375_s26 = smov 8   ;;  %s487_s2 = inlined_call_operand.vmem [shape: f32[8,32], index: 2, kind: input, shape index: {}]   ;;  %s488_s0 = inlined_call_operand.vmem [shape: f32[32,8], index: 0, kind: input, shape index: {}]   ;;  %s489_s1 = inlined_call_operand.vmem [shape: f32[1,2,8], index: 1, kind: input, shape index: {}]   ;;  %s490_s3 = inlined_call_operand.vmem [shape: f32[1,16], index: 3, kind: input, shape index: {}]   ;;  %s491_s4 = inlined_call_operand.vmem [shape: f32[32,16], index: 4, kind: output, shape index: {}]  }
   0x1   :  { %v21_v0 = vld [vmem:[%s487_s2] sm:$0xff]  ;;  %v19_v2 = vld [vmem:[%s488_s0 + $0x10] sm:$0xff]  ;;  %v18_v3 = vld [vmem:[%s488_s0 + $0x8] sm:$0xff]  ;;  %vm340_vm7 = vcmask 130112  }
   0x2   :  { %v17_v1 = vld [vmem:[%s488_s0] sm:$0xff]  ;;  %359 = vmatprep.subr.mxu0 %v21_v0  ;;  %367 = vmatprep.subr.mxu1 %v21_v0  ;;  %v20_v4 = vld [vmem:[%s488_s0 + $0x18] sm:$0xff]  ;;  %v163_v6 = vshrl.u32 %v162_v5, 7  ;;  %s373_s0 = smov 104  }
   0x3   :  { %360 = vmatpush3.msra.mxu0 %v21_v0  ;;  %368 = vmatpush3.msra.mxu1 %v21_v0  ;;  %v120_v7 = vld [vmem:[%s489_s1] sm:$0x3]  ;;  %s374_s1 = smov 16  }
   0x4   :  { %361 = vmatprep.mubr.msk.f32.mxu0 %vm22_vm0, %v17_v1  ;;  %364 = vmatprep.mubr.msk.f32.mxu1 %vm22_vm0, %v19_v2  ;;  %v159_v8 = vrot.slane %v120_v7, 2  ;;  %v164_v11 = vadd.s32 8, %v163_v6  ;;  %v165_v31 = vadd.s32 16, %v163_v6  ;;  %v171_v32 = vand.u32 15, %v163_v6  ;;  %v353_v43 = vld [vmem:[%s490_s3] ss:$0 sm:$0xff] }
   0x5   :  { %362 = vmatmul.mubr.msk.f32.vlgmr.msra.gmra.mrb[0].mxu0 %vm22_vm0, %v18_v3  ;;  %365 = vmatmul.mubr.msk.f32.vlgmr.msra.gmra.mrb[0].mxu1 %vm22_vm0, %v20_v4  ;;  %v166_v34 = vadd.s32 24, %v163_v6  ;;  %s376_s3 = smov 120  }
   0x6   :  { %v178_v28 = vand.u32 15, %v164_v11  ;;  %v185_v33 = vand.u32 15, %v165_v31  ;;  %vm215_vm4 = vcmp.eq.s32.totalorder %v171_v32, 0 }
   0x7   :  { %v192_v39 = vand.u32 15, %v166_v34 }
   0x8   :  { %vm232_vm3 = vcmp.eq.s32.totalorder %v178_v28, 15  ;;  %vm217_vm5 = vcmp.eq.s32.totalorder %v185_v33, 0 }
   0x9   :  { %vm234_vm6 = vcmp.eq.s32.totalorder %v192_v39, 15 }
  0xd8   :  { %v424_v9 = vpop.f32.mrb[0].mxu0  ;;  %v426_v10 = vpop.f32.mrb[0].mxu1 }
  0xd9   :  { %v148_v12 = vrot.slane %v424_v9, 1  ;;  %v131_v13 = vrot.slane %v426_v10, 7  ;;  %v152_v14 = vrot.slane %v426_v10, 1  ;;  %v431_v15 = vpop.f32.mrb[1].mxu0  ;;  %v433_v16 = vpop.f32.mrb[1].mxu1  ;;  %v127_v17 = vrot.slane %v424_v9, 7 }
  0xda   :  { %v147_v18 = vrot.slane %v431_v15, 1  ;;  %v129_v19 = vrot.slane %v433_v16, 7  ;;  %v150_v20 = vrot.slane %v433_v16, 1  ;;  %v126_v21 = vrot.slane %v431_v15, 7 }
  0xdb   :  { %v161_v22 = vsel %vm146_vm2, %v152_v14, %v159_v8 }
  0xdc   :  { %133 = vrot.lane.b32.xlu0 %v126_v21, %s373_s0  ;;  %v128_v23 = vsel %vm125_vm1, %v126_v21, %v127_v17  ;;  %v130_v24 = vsel %vm125_vm1, %v127_v17, %v129_v19  ;;  %v132_v25 = vsel %vm125_vm1, %v129_v19, %v131_v13  ;;  %v149_v26 = vsel %vm146_vm2, %v147_v18, %v148_v12 }
  0xdd   :  { %135 = vrot.lane.b32.xlu1 %v128_v23, %s373_s0  ;;  %v151_v27 = vsel %vm146_vm2, %v148_v12, %v150_v20  ;;  %v153_v29 = vsel %vm146_vm2, %v150_v20, %v152_v14  ;;  %v246_v44 = vsel %vm234_vm6, 0.0, %v161_v22 }
  0xde   :  { %v244_v30 = vsel %vm232_vm3, 0.0, %v151_v27 }
  0xe0   :  { %137 = vrot.lane.b32.xlu0 %v130_v24, %s373_s0 }
  0xe1   :  { %139 = vrot.lane.b32.xlu1 %v132_v25, %s373_s0 }
  0xe4   :  { %304 = vrot.lane.b32.xlu0 %v149_v26, %s374_s1 }
  0xe5   :  { %306 = vrot.lane.b32.xlu1 %v244_v30, %s374_s1 }
  0xe8   :  { %308 = vrot.lane.b32.xlu0 %v153_v29, %s374_s1 }
 0x14e   :  { %v134_v35 = vpop.permute.xlu0 %133 }
 0x14f   :  { %v145_v36 = vsel %vm125_vm1, %v120_v7, %v134_v35  ;;  %v136_v37 = vpop.permute.xlu1 %135 }
 0x150   :  { %254 = vrot.lane.b32.xlu1 %v136_v37, %s375_s26  ;;  %v227_v38 = vsel %vm215_vm4, 0.0, %v145_v36 }
 0x151   :  { %252 = vrot.lane.b32.xlu0 %v227_v38, %s375_s26 }
 0x152   :  { %v138_v40 = vpop.permute.xlu0 %137 }
 0x153   :  { %v229_v41 = vsel %vm217_vm5, 0.0, %v138_v40  ;;  %v140_v42 = vpop.permute.xlu1 %139 }
 0x154   :  { %258 = vrot.lane.b32.xlu1 %v140_v42, %s375_s26 }
 0x155   :  { %256 = vrot.lane.b32.xlu0 %v229_v41, %s375_s26 }
 0x156   :  { %v305_v45 = vpop.permute.xlu0 %304 }
 0x157   :  { %v307_v47 = vpop.permute.xlu1 %306  ;;  %v316_v51 = vadd.f32 %v305_v45, %v431_v15 }
 0x158   :  { %310 = vrot.lane.b32.xlu1 %v246_v44, %s374_s1  ;;  %v317_v52 = vadd.f32 %v424_v9, %v307_v47 }
 0x159   :  { %273 = vrot.lane.b32.xlu0 %v353_v43, %s375_s26 }
 0x15a   :  { %v309_v46 = vpop.permute.xlu0 %308 }
 0x15b   :  { %v318_v3 = vadd.f32 %v309_v46, %v433_v16 }
 0x1c2   :  { %v255_v49 = vpop.permute.xlu1 %254 }
 0x1c3   :  { %v253_v48 = vpop.permute.xlu0 %252  ;;  %v265_v57 = vadd.f32 %v424_v9, %v255_v49 }
 0x1c4   :  { %v264_v58 = vadd.f32 %v253_v48, %v431_v15 }
 0x1c6   :  { %v259_v53 = vpop.permute.xlu1 %258 }
 0x1c7   :  { %v257_v50 = vpop.permute.xlu0 %256  ;;  %v267_v62 = vadd.f32 %v426_v10, %v259_v53 }
 0x1c8   :  { %v266_v63 = vadd.f32 %v257_v50, %v433_v16 }
 0x1ca   :  { %v311_v61 = vpop.permute.xlu1 %310 }
 0x1cb   :  { %v274_v54 = vpop.permute.xlu0 %273  ;;  %v319_v0 = vadd.f32 %v426_v10, %v311_v61 }
 0x1cc   :  { %v320_v55 = vadd.f32 %v316_v51, %v274_v54  ;;  %v321_v56 = vadd.f32 %v317_v52, %v274_v54  ;;  %v276_v59 = vadd.f32 %v274_v54, %v264_v58  ;;  %v277_v60 = vadd.f32 %v274_v54, %v265_v57 }
 0x1cd   :  { %v278_v1 = vadd.f32 %v274_v54, %v266_v63  ;;  %v279_v2 = vadd.f32 %v274_v54, %v267_v62  ;;  %v322_v4 = vadd.f32 %v318_v3, %v274_v54  ;;  %v323_v5 = vadd.f32 %v319_v0, %v274_v54 }
 0x1ce   :  { %328 = vrot.lane.b32.xlu1 %v320_v55, %s376_s3  ;;  %330 = vrot.lane.b32.xlu0 %v321_v56, %s376_s3 }
 0x1d2   :  { %284 = vrot.lane.b32.xlu1 %v276_v59, %s376_s3  ;;  %286 = vrot.lane.b32.xlu0 %v277_v60, %s376_s3 }
 0x1d6   :  { %288 = vrot.lane.b32.xlu1 %v278_v1, %s376_s3  ;;  %290 = vrot.lane.b32.xlu0 %v279_v2, %s376_s3 }
 0x1da   :  { %332 = vrot.lane.b32.xlu1 %v322_v4, %s376_s3  ;;  %334 = vrot.lane.b32.xlu0 %v323_v5, %s376_s3 }
 0x240   :  { %v331_v6 = vpop.permute.xlu0 %330  ;;  %v329_v7 = vpop.permute.xlu1 %328 }
 0x244   :  { %v287_v8 = vpop.permute.xlu0 %286  ;;  %v285_v9 = vpop.permute.xlu1 %284 }
 0x245   :  { %297 = vst.msk [vmem:[%s491_s4 + $0x8] sm:$0xff] %vm22_vm0, %v287_v8  ;;  %296 = vst.msk [vmem:[%s491_s4] sm:$0xff] %vm22_vm0, %v285_v9 }
 0x246   :  { %342 = vst.msk [vmem:[%s491_s4 + $0x8] sm:$0xff] %vm340_vm7, %v331_v6  ;;  %341 = vst.msk [vmem:[%s491_s4] sm:$0xff] %vm340_vm7, %v329_v7 }
 0x248   :  { %v291_v10 = vpop.permute.xlu0 %290  ;;  %v289_v11 = vpop.permute.xlu1 %288 }
 0x249   :  { %299 = vst.msk [vmem:[%s491_s4 + $0x18] sm:$0xff] %vm22_vm0, %v291_v10  ;;  %298 = vst.msk [vmem:[%s491_s4 + $0x10] sm:$0xff] %vm22_vm0, %v289_v11 }
 0x24c   :  { %v335_v12 = vpop.permute.xlu0 %334  ;;  %v333_v13 = vpop.permute.xlu1 %332 }
 0x24d   :  { %344 = vst.msk [vmem:[%s491_s4 + $0x18] sm:$0xff] %vm340_vm7, %v335_v12  ;;  %343 = vst.msk [vmem:[%s491_s4 + $0x10] sm:$0xff] %vm340_vm7, %v333_v13 }

</bundles_post_ra>
